<compile_context>
chip_gen: v7x
topology: tpu7x:2x2x1
jax: 0.10.0
libtpu: 0.0.40
codegen_flags: <defaults>
</compile_context>

<pallas_src>
import functools

import jax
import jax.numpy as jnp
from jax import lax
from jax.experimental import pallas as pl
from jax.experimental.pallas import tpu as pltpu

_TILE_R = 512      # rows (sublanes) per grid step; 512*128*4B = 256 KiB f32 block
_LANES = 128       # lanes per row (vreg lane width)


def _cdiv(a, b):
    return -(-a // b)


def _prep(x):
    """Flatten (native dtype), zero-pad to a lane multiple, reshape to [rows, 128]."""
    flat = jnp.asarray(x).reshape(-1)
    n = flat.shape[0]
    pad = (-n) % _LANES
    if pad:
        flat = jnp.pad(flat, (0, pad))
    rows = flat.shape[0] // _LANES
    return flat.reshape(rows, _LANES), n, rows


# ---------------------------------------------------------------------------
# Fused sum-of-squared-error kernel ('mean' / 'sum' reductions)
# ---------------------------------------------------------------------------
def _make_sum_kernel(rows_list, tiles_list, offsets, block_rows):
    """Kernel over a 1-D grid that walks all (pred, target) pairs back-to-back."""
    num = len(rows_list)

    def kernel(*refs):
        in_refs = refs[: 2 * num]
        out_refs = refs[2 * num: 3 * num]
        acc_ref = refs[3 * num]
        i = pl.program_id(0)

        for j in range(num):
            off, tj, rj, brj = offsets[j], tiles_list[j], rows_list[j], block_rows[j]
            p_ref, t_ref, o_ref = in_refs[2 * j], in_refs[2 * j + 1], out_refs[j]
            in_seg = jnp.logical_and(i >= off, i < off + tj)

            if tj == 1:
                # Single-tile segment: the block equals the full array, so just
                # reduce directly (no accumulator, no mask, no OOB reads).
                @pl.when(in_seg)
                def _(p_ref=p_ref, t_ref=t_ref, o_ref=o_ref):
                    d = p_ref[...].astype(jnp.float32) - t_ref[...].astype(jnp.float32)
                    o_ref[0, 0] = jnp.sum(d * d)
            else:
                # Multi-tile segment: accumulate d*d into the VMEM scratch
                # (pure VPU per step), reduce once at the segment's last tile.
                @pl.when(in_seg)
                def _(p_ref=p_ref, t_ref=t_ref, o_ref=o_ref,
                      off=off, tj=tj, rj=rj, brj=brj):
                    loc = i - off

                    @pl.when(loc == 0)
                    def _():
                        acc_ref[...] = jnp.zeros_like(acc_ref)

                    d = p_ref[...].astype(jnp.float32) - t_ref[...].astype(jnp.float32)
                    sq = d * d
                    if rj % brj != 0:
                        # Mask the ragged last tile (rows past the array edge
                        # are undefined on read).
                        row_ids = loc * brj + lax.broadcasted_iota(
                            jnp.int32, (brj, _LANES), 0)
                        sq = jnp.where(row_ids < rj, sq, 0.0)
                    acc_ref[...] += sq

                    @pl.when(loc == tj - 1)
                    def _():
                        o_ref[0, 0] = jnp.sum(acc_ref[...])

    return kernel


def _fused_sq_err_sums(pairs):
    """One pallas_call computing sum((pred - target)^2) for every pair.

    Returns ([f32 scalar per pair], [original element count per pair])."""
    num = len(pairs)
    preds, tgts, ns, rows_list, block_rows, tiles_list = [], [], [], [], [], []
    for p, t in pairs:
        assert p.shape == t.shape, (p.shape, t.shape)
        p2, n, r = _prep(p)
        t2, _, _ = _prep(t)
        preds.append(p2)
        tgts.append(t2)
        ns.append(n)
        rows_list.append(r)
        block_rows.append(r if r <= _TILE_R else _TILE_R)
        tiles_list.append(_cdiv(r, block_rows[-1]))

    offsets = [0] * num
    for j in range(1, num):
        offsets[j] = offsets[j - 1] + tiles_list[j - 1]
    total_tiles = offsets[-1] + tiles_list[-1]

    in_specs = []
    operands = []
    for j in range(num):
        brj, off, tj = block_rows[j], offsets[j], tiles_list[j]
        # Clamp the block index outside this pair's segment so the block index
        # stays constant there (no redundant re-DMA, never out of range).
        idx = lambda i, off=off, tj=tj: (
            jnp.minimum(jnp.maximum(i - off, 0), tj - 1), 0)
        spec = pl.BlockSpec((brj, _LANES), idx)
        in_specs += [spec, spec]
        operands += [preds[j], tgts[j]]

    out_shapes = tuple(jax.ShapeDtypeStruct((1, 1), jnp.float32) for _ in range(num))
    out_specs = tuple(
        pl.BlockSpec((1, 1), lambda i: (0, 0), memory_space=pltpu.SMEM)
        for _ in range(num))

    in_bytes = sum(int(p.size) * p.dtype.itemsize + int(t.size) * t.dtype.itemsize
                   for p, t in pairs)
    cost = pl.CostEstimate(flops=3 * sum(ns), transcendentals=0,
                           bytes_accessed=in_bytes + 4 * num)

    sums = pl.pallas_call(
        _make_sum_kernel(rows_list, tiles_list, offsets, block_rows),
        out_shape=out_shapes,
        grid_spec=pltpu.PrefetchScalarGridSpec(
            num_scalar_prefetch=0,
            grid=(total_tiles,),
            in_specs=in_specs,
            out_specs=out_specs,
            scratch_shapes=[pltpu.VMEM((_TILE_R, _LANES), jnp.float32)],
        ),
        compiler_params=pltpu.CompilerParams(
            dimension_semantics=("arbitrary",)),
        cost_estimate=cost,
    )(*operands)
    return [s[0, 0] for s in sums], ns


# ---------------------------------------------------------------------------
# Elementwise kernel (reduction='none')
# ---------------------------------------------------------------------------
def _sq_err_elem_kernel(p_ref, t_ref, o_ref):
    d = p_ref[...].astype(jnp.float32) - t_ref[...].astype(jnp.float32)
    o_ref[...] = (d * d).astype(o_ref.dtype)


def _mse_none(pred, target, out_dtype):
    p2, n, rows = _prep(pred)
    t2, _, _ = _prep(target)
    br = rows if rows <= _TILE_R else _TILE_R
    grid = (_cdiv(rows, br),)
    cost = pl.CostEstimate(
        flops=2 * n, transcendentals=0,
        bytes_accessed=int(pred.size) * pred.dtype.itemsize
        + int(target.size) * target.dtype.itemsize
        + rows * _LANES * jnp.dtype(out_dtype).itemsize)
    sq = pl.pallas_call(
        _sq_err_elem_kernel,
        out_shape=jax.ShapeDtypeStruct((rows, _LANES), out_dtype),
        grid_spec=pltpu.PrefetchScalarGridSpec(
            num_scalar_prefetch=0,
            grid=grid,
            in_specs=[pl.BlockSpec((br, _LANES), lambda i: (i, 0)),
                      pl.BlockSpec((br, _LANES), lambda i: (i, 0))],
            out_specs=pl.BlockSpec((br, _LANES), lambda i: (i, 0)),
        ),
        compiler_params=pltpu.CompilerParams(
            dimension_semantics=("parallel",)),
        cost_estimate=cost,
    )(p2, t2)
    return sq.reshape(-1)[:n].reshape(pred.shape)


# ---------------------------------------------------------------------------
# Public wrappers
# ---------------------------------------------------------------------------
@functools.partial(jax.jit, static_argnames=("reduction", "out_dtype"))
def pallas_mse(pred, target, reduction="mean", out_dtype=None):
    """MSE matching torch.nn.functional.mse_loss semantics (compute in f32)."""
    assert pred.shape == target.shape, (pred.shape, target.shape)
    assert reduction in ("mean", "sum", "none"), reduction
    if out_dtype is None:
        out_dtype = jnp.promote_types(pred.dtype, target.dtype)
    if reduction == "none":
        return _mse_none(pred, target, out_dtype)
    (total,), (n,) = _fused_sq_err_sums([(pred, target)])
    if reduction == "mean":
        total = total / jnp.float32(n)
    return total.astype(out_dtype)


@functools.partial(jax.jit, static_argnames=("reduction",))
def aejeps_loss(goal_img_out, text_out, cmd_out,
                goal_img, text_target, cmd_target, reduction="mean"):
    """Forward pass of AEJEPSLoss: returns (L_img, L_text, L_cmd)."""
    img_dtype = jnp.promote_types(goal_img_out.dtype, goal_img.dtype)

    if reduction == "none":
        # Per-element losses keep their own shapes -> three elementwise calls.
        L_img = _mse_none(goal_img_out, goal_img, img_dtype)
        L_text = _mse_none(text_out, text_target, jnp.float32)   # .float() in module
        L_cmd = _mse_none(cmd_out, cmd_target, jnp.float32)
        return (L_img, L_text, L_cmd)

    # 'mean' / 'sum': all three reductions fused into a single pallas_call.
    sums, ns = _fused_sq_err_sums([
        (goal_img_out, goal_img),
        (text_out, text_target),
        (cmd_out, cmd_target),
    ])
    if reduction == "mean":
        sums = [s / jnp.float32(n) for s, n in zip(sums, ns)]
    L_img = sums[0].astype(img_dtype)
    L_text = sums[1]   # module casts text/cmd to .float() -> f32 results
    L_cmd = sums[2]
    return (L_img, L_text, L_cmd)


# ---------------------------------------------------------------------------
# Demo / self-check
# ---------------------------------------------------------------------------
if __name__ == "__main__":
    key = jax.random.PRNGKey(0)
    k = jax.random.split(key, 8)

    # Small shapes consistent with the module's forward:
    #   goal image (NCHW), text sequence [B, T, V], motor command sequence [B, T, D]
    B, C, H, W = 2, 4, 16, 16
    T, V, Dm = 8, 32, 16

    goal_img_out = jax.random.normal(k[0], (B, C, H, W), jnp.float32)
    goal_img = jax.random.normal(k[1], (B, C, H, W), jnp.float32)
    text_out = jax.random.normal(k[2], (B, T, V), jnp.bfloat16)     # upcast happens in-kernel
    text_target = jax.random.normal(k[3], (B, T, V), jnp.bfloat16)
    cmd_out = jax.random.normal(k[4], (B, T, Dm), jnp.float32)
    cmd_target = jax.random.normal(k[5], (B, T, Dm), jnp.float32)

    L_img, L_text, L_cmd = aejeps_loss(
        goal_img_out, text_out, cmd_out, goal_img, text_target, cmd_target,
        reduction="mean")
    jax.block_until_ready((L_img, L_text, L_cmd))

    # Reference check against plain-JAX MSE.
    ref_img = jnp.mean((goal_img_out - goal_img) ** 2)
    ref_text = jnp.mean(
        (text_out.astype(jnp.float32) - text_target.astype(jnp.float32)) ** 2)
    ref_cmd = jnp.mean((cmd_out - cmd_target) ** 2)
    assert jnp.allclose(L_img, ref_img, rtol=1e-5, atol=1e-5)
    assert jnp.allclose(L_text, ref_text, rtol=1e-5, atol=1e-5)
    assert jnp.allclose(L_cmd, ref_cmd, rtol=1e-5, atol=1e-5)

    # Extra coverage: multi-tile + ragged-tail path of the reduction kernel
    # (600*130 = 78000 elems -> 610 rows -> 2 tiles of 512, last tile 98 valid
    # rows and 48 zero-padded lanes in the final row).
    a = jax.random.normal(k[6], (600, 130), jnp.float32)
    b = jax.random.normal(k[7], (600, 130), jnp.float32)
    s = pallas_mse(a, b, reduction="sum")
    jax.block_until_ready(s)
    assert jnp.allclose(s, jnp.sum((a - b) ** 2), rtol=1e-4, atol=1e-2)

    # reduction='none' path (elementwise kernel).
    e = pallas_mse(cmd_out, cmd_target, reduction="none")
    jax.block_until_ready(e)
    assert jnp.allclose(e, (cmd_out - cmd_target) ** 2, rtol=1e-5, atol=1e-5)

    print("KERNEL_OK")
</pallas_src>

<mosaic_0001>
module attributes {stable_mosaic.version = 11 : i64} {
  func.func @kernel(%arg0: i32, %arg1: memref<16x128xf32, #tpu.memory_space<vmem>>, %arg2: memref<16x128xf32, #tpu.memory_space<vmem>>, %arg3: memref<4x128xbf16, #tpu.memory_space<vmem>>, %arg4: memref<4x128xbf16, #tpu.memory_space<vmem>>, %arg5: memref<2x128xf32, #tpu.memory_space<vmem>>, %arg6: memref<2x128xf32, #tpu.memory_space<vmem>>, %arg7: memref<1x1xf32, #tpu.memory_space<smem>>, %arg8: memref<1x1xf32, #tpu.memory_space<smem>>, %arg9: memref<1x1xf32, #tpu.memory_space<smem>>, %arg10: memref<512x128xf32, #tpu.memory_space<vmem>>) attributes {dimension_semantics = [#tpu.dimension_semantics<arbitrary>], iteration_bounds = array<i64: 3>, scalar_prefetch = 0 : i64, scratch_operands = 1 : i64, tpu.core_type = #tpu.core_type<tc>, window_params = [{transform_indices = @transform_0, window_bounds = array<i64: 16, 128>}, {transform_indices = @transform_1, window_bounds = array<i64: 16, 128>}, {transform_indices = @transform_2, window_bounds = array<i64: 4, 128>}, {transform_indices = @transform_3, window_bounds = array<i64: 4, 128>}, {transform_indices = @transform_4, window_bounds = array<i64: 2, 128>}, {transform_indices = @transform_5, window_bounds = array<i64: 2, 128>}, {transform_indices = @transform_6, window_bounds = array<i64: 1, 1>}, {transform_indices = @transform_7, window_bounds = array<i64: 1, 1>}, {transform_indices = @transform_8, window_bounds = array<i64: 1, 1>}]} {
    %c0_i32 = arith.constant 0 : i32
    %0 = arith.cmpi sge, %arg0, %c0_i32 : i32
    %c1_i32 = arith.constant 1 : i32
    %1 = arith.cmpi slt, %arg0, %c1_i32 : i32
    %2 = arith.andi %0, %1 : i1
    %3 = arith.extui %2 : i1 to i32
    %c0_i32_0 = arith.constant 0 : i32
    %4 = arith.cmpi ne, %3, %c0_i32_0 : i32
    scf.if %4 {
      %c0 = arith.constant 0 : index
      %c0_5 = arith.constant 0 : index
      %15 = vector.load %arg1[%c0, %c0_5] : memref<16x128xf32, #tpu.memory_space<vmem>>, vector<16x128xf32>
      %c0_6 = arith.constant 0 : index
      %c0_7 = arith.constant 0 : index
      %16 = vector.load %arg2[%c0_6, %c0_7] : memref<16x128xf32, #tpu.memory_space<vmem>>, vector<16x128xf32>
      %17 = arith.subf %15, %16 : vector<16x128xf32>
      %18 = arith.mulf %17, %17 : vector<16x128xf32>
      %19 = vector.shape_cast %18 : vector<16x128xf32> to vector<1x16x128xf32>
      %cst = arith.constant dense<0.000000e+00> : vector<1xf32>
      %20 = vector.multi_reduction <add>, %19, %cst [1, 2] : vector<1x16x128xf32> to vector<1xf32>
      %21 = vector.shape_cast %20 : vector<1xf32> to vector<1x1x1xf32>
      %22 = vector.extract %21[0, 0, 0] : f32 from vector<1x1x1xf32>
      %c0_8 = arith.constant 0 : index
      %c0_9 = arith.constant 0 : index
      %23 = memref.load %arg7[%c0_8, %c0_9] : memref<1x1xf32, #tpu.memory_space<smem>>
      memref.store %22, %arg7[%c0_8, %c0_9] : memref<1x1xf32, #tpu.memory_space<smem>>
    } else {
    }
    %c1_i32_1 = arith.constant 1 : i32
    %5 = arith.cmpi sge, %arg0, %c1_i32_1 : i32
    %c2_i32 = arith.constant 2 : i32
    %6 = arith.cmpi slt, %arg0, %c2_i32 : i32
    %7 = arith.andi %5, %6 : i1
    %8 = arith.extui %7 : i1 to i32
    %c0_i32_2 = arith.constant 0 : i32
    %9 = arith.cmpi ne, %8, %c0_i32_2 : i32
    scf.if %9 {
      %c0 = arith.constant 0 : index
      %c0_5 = arith.constant 0 : index
      %15 = vector.load %arg3[%c0, %c0_5] : memref<4x128xbf16, #tpu.memory_space<vmem>>, vector<4x128xbf16>
      %16 = arith.extf %15 : vector<4x128xbf16> to vector<4x128xf32>
      %c0_6 = arith.constant 0 : index
      %c0_7 = arith.constant 0 : index
      %17 = vector.load %arg4[%c0_6, %c0_7] : memref<4x128xbf16, #tpu.memory_space<vmem>>, vector<4x128xbf16>
      %18 = arith.extf %17 : vector<4x128xbf16> to vector<4x128xf32>
      %19 = arith.subf %16, %18 : vector<4x128xf32>
      %20 = arith.mulf %19, %19 : vector<4x128xf32>
      %21 = vector.shape_cast %20 : vector<4x128xf32> to vector<1x4x128xf32>
      %cst = arith.constant dense<0.000000e+00> : vector<1xf32>
      %22 = vector.multi_reduction <add>, %21, %cst [1, 2] : vector<1x4x128xf32> to vector<1xf32>
      %23 = vector.shape_cast %22 : vector<1xf32> to vector<1x1x1xf32>
      %24 = vector.extract %23[0, 0, 0] : f32 from vector<1x1x1xf32>
      %c0_8 = arith.constant 0 : index
      %c0_9 = arith.constant 0 : index
      %25 = memref.load %arg8[%c0_8, %c0_9] : memref<1x1xf32, #tpu.memory_space<smem>>
      memref.store %24, %arg8[%c0_8, %c0_9] : memref<1x1xf32, #tpu.memory_space<smem>>
    } else {
    }
    %c2_i32_3 = arith.constant 2 : i32
    %10 = arith.cmpi sge, %arg0, %c2_i32_3 : i32
    %c3_i32 = arith.constant 3 : i32
    %11 = arith.cmpi slt, %arg0, %c3_i32 : i32
    %12 = arith.andi %10, %11 : i1
    %13 = arith.extui %12 : i1 to i32
    %c0_i32_4 = arith.constant 0 : i32
    %14 = arith.cmpi ne, %13, %c0_i32_4 : i32
    scf.if %14 {
      %c0 = arith.constant 0 : index
      %c0_5 = arith.constant 0 : index
      %15 = vector.load %arg5[%c0, %c0_5] : memref<2x128xf32, #tpu.memory_space<vmem>>, vector<2x128xf32>
      %c0_6 = arith.constant 0 : index
      %c0_7 = arith.constant 0 : index
      %16 = vector.load %arg6[%c0_6, %c0_7] : memref<2x128xf32, #tpu.memory_space<vmem>>, vector<2x128xf32>
      %17 = arith.subf %15, %16 : vector<2x128xf32>
      %18 = arith.mulf %17, %17 : vector<2x128xf32>
      %19 = vector.shape_cast %18 : vector<2x128xf32> to vector<1x2x128xf32>
      %cst = arith.constant dense<0.000000e+00> : vector<1xf32>
      %20 = vector.multi_reduction <add>, %19, %cst [1, 2] : vector<1x2x128xf32> to vector<1xf32>
      %21 = vector.shape_cast %20 : vector<1xf32> to vector<1x1x1xf32>
      %22 = vector.extract %21[0, 0, 0] : f32 from vector<1x1x1xf32>
      %c0_8 = arith.constant 0 : index
      %c0_9 = arith.constant 0 : index
      %23 = memref.load %arg9[%c0_8, %c0_9] : memref<1x1xf32, #tpu.memory_space<smem>>
      memref.store %22, %arg9[%c0_8, %c0_9] : memref<1x1xf32, #tpu.memory_space<smem>>
    } else {
    }
    return
  }
  func.func @transform_0(%arg0: i32) -> (i32, i32) {
    %c0_i32 = arith.constant 0 : i32
    %0 = arith.subi %arg0, %c0_i32 : i32
    %c0_i32_0 = arith.constant 0 : i32
    %1 = arith.maxsi %0, %c0_i32_0 : i32
    %c0_i32_1 = arith.constant 0 : i32
    %2 = arith.minsi %1, %c0_i32_1 : i32
    %c0_i32_2 = arith.constant 0 : i32
    %c0_i32_3 = arith.constant 0 : i32
    return %2, %c0_i32_2 : i32, i32
  }
  func.func @transform_1(%arg0: i32) -> (i32, i32) {
    %c0_i32 = arith.constant 0 : i32
    %0 = arith.subi %arg0, %c0_i32 : i32
    %c0_i32_0 = arith.constant 0 : i32
    %1 = arith.maxsi %0, %c0_i32_0 : i32
    %c0_i32_1 = arith.constant 0 : i32
    %2 = arith.minsi %1, %c0_i32_1 : i32
    %c0_i32_2 = arith.constant 0 : i32
    %c0_i32_3 = arith.constant 0 : i32
    return %2, %c0_i32_2 : i32, i32
  }
  func.func @transform_2(%arg0: i32) -> (i32, i32) {
    %c1_i32 = arith.constant 1 : i32
    %0 = arith.subi %arg0, %c1_i32 : i32
    %c0_i32 = arith.constant 0 : i32
    %1 = arith.maxsi %0, %c0_i32 : i32
    %c0_i32_0 = arith.constant 0 : i32
    %2 = arith.minsi %1, %c0_i32_0 : i32
    %c0_i32_1 = arith.constant 0 : i32
    %c0_i32_2 = arith.constant 0 : i32
    return %2, %c0_i32_1 : i32, i32
  }
  func.func @transform_3(%arg0: i32) -> (i32, i32) {
    %c1_i32 = arith.constant 1 : i32
    %0 = arith.subi %arg0, %c1_i32 : i32
    %c0_i32 = arith.constant 0 : i32
    %1 = arith.maxsi %0, %c0_i32 : i32
    %c0_i32_0 = arith.constant 0 : i32
    %2 = arith.minsi %1, %c0_i32_0 : i32
    %c0_i32_1 = arith.constant 0 : i32
    %c0_i32_2 = arith.constant 0 : i32
    return %2, %c0_i32_1 : i32, i32
  }
  func.func @transform_4(%arg0: i32) -> (i32, i32) {
    %c2_i32 = arith.constant 2 : i32
    %0 = arith.subi %arg0, %c2_i32 : i32
    %c0_i32 = arith.constant 0 : i32
    %1 = arith.maxsi %0, %c0_i32 : i32
    %c0_i32_0 = arith.constant 0 : i32
    %2 = arith.minsi %1, %c0_i32_0 : i32
    %c0_i32_1 = arith.constant 0 : i32
    %c0_i32_2 = arith.constant 0 : i32
    return %2, %c0_i32_1 : i32, i32
  }
  func.func @transform_5(%arg0: i32) -> (i32, i32) {
    %c2_i32 = arith.constant 2 : i32
    %0 = arith.subi %arg0, %c2_i32 : i32
    %c0_i32 = arith.constant 0 : i32
    %1 = arith.maxsi %0, %c0_i32 : i32
    %c0_i32_0 = arith.constant 0 : i32
    %2 = arith.minsi %1, %c0_i32_0 : i32
    %c0_i32_1 = arith.constant 0 : i32
    %c0_i32_2 = arith.constant 0 : i32
    return %2, %c0_i32_1 : i32, i32
  }
  func.func @transform_6(%arg0: i32) -> (i32, i32) {
    %c0_i32 = arith.constant 0 : i32
    %c0_i32_0 = arith.constant 0 : i32
    %c0_i32_1 = arith.constant 0 : i32
    return %c0_i32, %c0_i32_0 : i32, i32
  }
  func.func @transform_7(%arg0: i32) -> (i32, i32) {
    %c0_i32 = arith.constant 0 : i32
    %c0_i32_0 = arith.constant 0 : i32
    %c0_i32_1 = arith.constant 0 : i32
    return %c0_i32, %c0_i32_0 : i32, i32
  }
  func.func @transform_8(%arg0: i32) -> (i32, i32) {
    %c0_i32 = arith.constant 0 : i32
    %c0_i32_0 = arith.constant 0 : i32
    %c0_i32_1 = arith.constant 0 : i32
    return %c0_i32, %c0_i32_0 : i32, i32
  }
}

</mosaic_0001>

<bundles_post_ra>
// kernel: aejeps_loss.1
= control target key start
LH: loop header
LB: loop body
LE: loop exit
PB: predicated region body
PF: predicated region fallthrough
CT: control target
= control target key end

     0   :  { %14 = vsyncpa [#allocation4], 0  ;;  %s1151_s0 = inlined_call_operand.vmem [shape: f32[16,128], index: 0, kind: input, shape index: {}]   ;;  %s1152_s1 = inlined_call_operand.vmem [shape: f32[16,128], index: 1, kind: input, shape index: {}]   ;;  %s1153_s2 = inlined_call_operand.vmem [shape: bf16[4,128], index: 2, kind: input, shape index: {}]   ;;  %s1154_s3 = inlined_call_operand.vmem [shape: bf16[4,128], index: 3, kind: input, shape index: {}]   ;;  %s1155_s4 = inlined_call_operand.vmem [shape: f32[2,128], index: 4, kind: input, shape index: {}]   ;;  %s1156_s5 = inlined_call_operand.vmem [shape: f32[2,128], index: 5, kind: input, shape index: {}]   ;;  %s1157_s6 = inlined_call_operand.hbm [shape: f32[1,1], index: 6, kind: output, shape index: {0}]   ;;  %s1158_s7 = inlined_call_operand.hbm [shape: f32[1,1], index: 7, kind: output, shape index: {1}]   ;;  %s1159_s8 = inlined_call_operand.hbm [shape: f32[1,1], index: 8, kind: output, shape index: {2}]  }
   0x1   :  { %15 = vsyncpa [#allocation6], 0  ;;  %s1051_s27 = smov 0  }
   0x2 LB: > { %s1057_s28 = sadd.s32 4294967295, %s1001_s27   ;;  %p865_p0 = scmp.ge.s32.totalorder %s1001_s27, 1  ;;  %s1001_s27 = sphi %s1051_s27, %s21_s27  }
   0x3   : > { %p414_p1 = scmp.lt.s32.totalorder %s1001_s27, 4 }
   0x5   : > { %p415_p2 = pnand %p865_p0, %p414_p1 }
   0x6   : > { %p576_p3 = scmp.ge.s32.totalorder (!%p415_p2), %s1057_s28, 0  ;;  %p577_p4 = scmp.lt.s32.totalorder (!%p415_p2), %s1057_s28, 1 }
   0x7   : > { %418 = sbr.rel (%p415_p2) target bundleno = 698 (0x2ba), region = 44 }
   0x8   : > { %p578_p5 = pnand (!%p415_p2), %p577_p4, %p576_p3 }
   0xe   : > { %581 = sbr.rel (%p578_p5) target bundleno = 227 (0xe3), region = 48  ;;  %v582_v0 = vld [vmem:[%s1151_s0] sm:$0xff] (!%p578_p5)  ;;  %v583_v1 = vld [vmem:[%s1151_s0 + $0x8] sm:$0xff] (!%p578_p5) }
   0xf   : > { %v584_v2 = vld [vmem:[%s1152_s1] sm:$0xff] (!%p578_p5)  ;;  %v585_v3 = vld [vmem:[%s1152_s1 + $0x8] sm:$0xff] (!%p578_p5) }
  0x10   : > { %v586_v4 = vsub.f32 (!%p578_p5), %v582_v0, %v584_v2  ;;  %v587_v5 = vsub.f32 (!%p578_p5), %v583_v1, %v585_v3 }
  0x12   : > { %v588_v6 = vmul.f32 (!%p578_p5), %v586_v4, %v586_v4  ;;  %v589_v7 = vmul.f32 (!%p578_p5), %v587_v5, %v587_v5 }
  0x14   : > { %v590_v8 = vadd.f32 (!%p578_p5), %v589_v7, %v588_v6 }
  0x16   : > { %591 = vadd.xlane.f32.xlu0 %v590_v8 }
  0xa3   : > { %v592_v9 = vpop.xlane.xlu0 %591 }
  0xa4   : > { %v593_v10 = vrot.slane %v592_v9, 4 }
  0xa6   : > { %v594_v11 = vadd.f32 %v593_v10, %v592_v9 }
  0xa8   : > { %v595_v12 = vrot.slane %v594_v11, 2 }
  0xaa   : > { %v596_v13 = vadd.f32 %v595_v12, %v594_v11 }
  0xac   : > { %v597_v14 = vrot.slane %v596_v13, 1 }
  0xae   : > { %v598_v15 = vadd.f32 %v597_v14, %v596_v13 }
  0xb0   : > { %916 = vpush %v598_v15 }
  0xe1   : > { %s917_s15 = spop %916 }
  0xe2   : > { %601 = sst [smem:[#allocation3]] %s917_s15 }
  0xe3 PF: > { %p602_p6 = scmp.ge.s32.totalorder %s1057_s28, 1  ;;  %p603_p7 = scmp.lt.s32.totalorder %s1057_s28, 2 }
  0xe5   : > { %p604_p8 = pnand %p603_p7, %p602_p6 }
  0xe6   : > { %v608_v16 = vld [vmem:[%s1153_s2] sm:$0x3] (!%p604_p8)  ;;  %vm614_vm0 = vcmask (!%p604_p8), 1043456  }
  0xe7   : > { %607 = sbr.rel (%p604_p8) target bundleno = 444 (0x1bc), region = 52  ;;  %v610_v17 = vld [vmem:[%s1154_s3] sm:$0x3] (!%p604_p8)  ;;  %v609_v18 = vunpack.c.l.bf16 (!%p604_p8), %v608_v16 }
  0xe8   : > { %v611_v19 = vunpack.c.l.bf16 (!%p604_p8), %v610_v17 }
  0xea   : > { %v612_v20 = vsub.f32 (!%p604_p8), %v609_v18, %v611_v19 }
  0xec   : > { %v613_v21 = vmul.f32 (!%p604_p8), %v612_v20, %v612_v20 }
  0xee   : > { %v615_v22 = vsel %vm614_vm0, %v613_v21, 0.0 }
  0xef   : > { %616 = vadd.xlane.f32.xlu0 %v615_v22 }
 0x17c   : > { %v617_v23 = vpop.xlane.xlu0 %616 }
 0x17d   : > { %v618_v24 = vrot.slane %v617_v23, 4 }
 0x17f   : > { %v619_v25 = vadd.f32 %v618_v24, %v617_v23 }
 0x181   : > { %v620_v26 = vrot.slane %v619_v25, 2 }
 0x183   : > { %v621_v27 = vadd.f32 %v620_v26, %v619_v25 }
 0x185   : > { %v622_v28 = vrot.slane %v621_v27, 1 }
 0x187   : > { %v623_v29 = vadd.f32 %v622_v28, %v621_v27 }
 0x189   : > { %918 = vpush %v623_v29 }
 0x1ba   : > { %s919_s20 = spop %918 }
 0x1bb   : > { %626 = sst [smem:[#allocation5]] %s919_s20 }
 0x1bc PF: > { %p627_p9 = scmp.ge.s32.totalorder %s1057_s28, 2  ;;  %p628_p10 = scmp.lt.s32.totalorder %s1057_s28, 3 }
 0x1be   : > { %p629_p11 = pnand %p628_p10, %p627_p9 }
 0x1bf   : > { %v633_v30 = vld [vmem:[%s1155_s4] sm:$0x3] (!%p629_p11)  ;;  %vm637_vm1 = vcmask (!%p629_p11), 1041408  }
 0x1c0   : > { %632 = sbr.rel (%p629_p11) target bundleno = 659 (0x293), region = 56  ;;  %v634_v31 = vld [vmem:[%s1156_s5] sm:$0x3] (!%p629_p11) }
 0x1c1   : > { %v635_v32 = vsub.f32 (!%p629_p11), %v633_v30, %v634_v31 }
 0x1c3   : > { %v636_v33 = vmul.f32 (!%p629_p11), %v635_v32, %v635_v32 }
 0x1c5   : > { %v638_v34 = vsel (!%p629_p11), %vm637_vm1, %v636_v33, 0.0 }
 0x1c6   : > { %639 = vadd.xlane.f32.xlu0 (!%p629_p11), %v638_v34 }
 0x253   : > { %v640_v35 = vpop.xlane.xlu0 %639 }
 0x254   : > { %v641_v36 = vrot.slane %v640_v35, 4 }
 0x256   : > { %v642_v37 = vadd.f32 %v641_v36, %v640_v35 }
 0x258   : > { %v643_v38 = vrot.slane %v642_v37, 2 }
 0x25a   : > { %v644_v39 = vadd.f32 %v643_v38, %v642_v37 }
 0x25c   : > { %v645_v40 = vrot.slane %v644_v39, 1 }
 0x25e   : > { %v646_v41 = vadd.f32 %v645_v40, %v644_v39 }
 0x260   : > { %920 = vpush %v646_v41 }
 0x291   : > { %s921_s25 = spop %920 }
 0x292   : > { %649 = sst [smem:[#allocation7]] %s921_s25 }
 0x293 PF: > { %p934_p12 = scmp.eq.s32.totalorder %s1057_s28, 2  ;;  %s951_s30 = scalar_lea.hbm %s1158_s7, 16 }
 0x294   : > { %p952_p13 = scmp.ne.s32.totalorder %s1158_s7, %s951_s30  ;;  %p957_p2 = scmp.lt.u32.totalorder %s951_s30, %s1158_s7 }
 0x296   : > { %p953_p0 = pnand %p952_p13, %p934_p12 }
 0x298   : > { %p954_p1 = pneg %p953_p0 }
 0x29a   : > { %p959_p3 = pnand %p957_p2, %p954_p1 }
 0x29c   : > { %962 = shalt.err (!%p959_p3)
}
 0x29d   : > { %s1003_s13 = smov [#allocation5]   ;;  %s963_s18 = scalar_lea.hbm %s1157_s6, 16 }
 0x29e   : > { %925 = dma.smem_to_hbm (%p934_p12), %s1003_s13, 16, %s1158_s7, [#allocation6]  }
 0x29f   : > { %p964_p4 = scmp.ne.s32.totalorder %s1157_s6, %s963_s18  ;;  %p969_p7 = scmp.lt.u32.totalorder %s963_s18, %s1157_s6 }
 0x2a1   : > { %p965_p5 = pnand %p964_p4, %p934_p12 }
 0x2a3   : > { %p966_p6 = pneg %p965_p5 }
 0x2a5   : > { %p971_p8 = pnand %p969_p7, %p966_p6 }
 0x2a7   : > { %974 = shalt.err (!%p971_p8)
}
 0x2a8   : > { %s1004_s23 = smov [#allocation3]   ;;  %s975_s30 = scalar_lea.hbm %s1159_s8, 16 }
 0x2a9   : > { %923 = dma.smem_to_hbm (%p934_p12), %s1004_s23, 16, %s1157_s6, [#allocation4]  }
 0x2aa   : > { %p976_p9 = scmp.ne.s32.totalorder %s1159_s8, %s975_s30  ;;  %p981_p13 = scmp.lt.u32.totalorder %s975_s30, %s1159_s8 }
 0x2ac   : > { %p977_p10 = pnand %p976_p9, %p934_p12 }
 0x2ae   : > { %p978_p11 = pneg %p977_p10 }
 0x2b0   : > { %p983_p0 = pnand %p981_p13, %p978_p11 }
 0x2b2   : > { %986 = shalt.err (!%p983_p0)
}
 0x2b3   : > { %s1005_s13 = smov [#allocation7]  }
 0x2b4   : > { %927 = dma.smem_to_hbm (%p934_p12), %s1005_s13, 16, %s1159_s8, [#allocation6]  }
 0x2b5   : > { %992 = dma.done.wait (%p934_p12), [#allocation4], 16  }
 0x2b6   : > { %994 = vsyncadd (%p934_p12), [#allocation4], 4294967280 }
 0x2b7   : > { %996 = dma.done.wait (%p934_p12), [#allocation6], 32  }
 0x2b8   : > { %998 = vsyncadd (%p934_p12), [#allocation6], 4294967264 }
 0x2b9   : > { %689 = sfence }
 0x2ba PF: > { %s21_s27 = sadd.s32 1, %s1001_s27  }
 0x2bb   : > { %p18_p1 = scmp.ge.s32.totalorder %s21_s27, 5  }
 0x2bd   :  { %20 = sbr.rel (!%p18_p1) target bundleno = 2 (0x2), region = 117 }
 0x2c4   :  { %695 = vsyncpa [#allocation4], 1 }
 0x2c5   :  { %697 = vsyncpa [#allocation4 + $0x1], 1 }
 0x2c6   :  { %698 = vsyncpa [#allocation6], 1 }

</bundles_post_ra>
